<compile_context>
chip_gen: v7x
topology: tpu7x:2x2x1
jax: 0.10.0
libtpu: 0.0.40
codegen_flags: <defaults>
</compile_context>

<pallas_src>
import jax
import jax.numpy as jnp
from jax.experimental import pallas as pl
from jax.experimental.pallas import tpu as pltpu

EPS = 1e-5

# Weight-slab row layout (160 rows x 64 lanes, f32):
#   rows   0: 32  -> W_sa  (block diag: ws in [0:24, 0:32], wa in [24:28, 32:64])
#   rows  32: 96  -> wq    (64, 64)
#   rows  96:160  -> wo    (64, 32) zero-padded to 64 lanes
# Vector-slab row layout (16 rows x 64 lanes, f32):
#   0: b_sa = [bs | ba]   1: bq    2: g1    3: be1
#   4: bo (pad)           5: g2    6: be2   7: wo2 row (pad)
#   8: bo2 broadcast      9..15: unused padding


def qnet2_kernel(xa_ref, w_ref, v_ref, out_ref):
    xa = xa_ref[...]                       # (B, 32)  = [x | a | 0]
    v = v_ref[...]                         # (16, 64) vector slab

    b_sa = v[0:1, :]
    bq   = v[1:2, :]
    g1   = v[2:3, :]
    be1  = v[3:4, :]
    bo   = v[4:5, :]
    g2   = v[5:6, :]
    be2  = v[6:7, :]
    wo2  = v[7:8, :]
    bo2  = v[8:9, 0:1]                     # (1, 1) scalar bias of fc_out2

    # --- fused fc_s / fc_a + relu: h = relu([x|a] @ blockdiag(ws, wa) + [bs|ba])
    h = jnp.maximum(
        jnp.dot(xa, w_ref[0:32, :], preferred_element_type=jnp.float32) + b_sa,
        0.0)

    # --- fc_q (concat folded into a single (64,64) matmul)
    q = jnp.dot(h, w_ref[32:96, :], preferred_element_type=jnp.float32) + bq

    # --- bn1 (training-mode batch stats, one-pass) + relu
    m = jnp.mean(q, axis=0, keepdims=True)
    msq = jnp.mean(q * q, axis=0, keepdims=True)
    scale = g1 * jax.lax.rsqrt(jnp.maximum(msq - m * m, 0.0) + EPS)
    q = jnp.maximum(q * scale + (be1 - m * scale), 0.0)

    # --- fc_out (lane-padded to 64; padded columns stay exactly zero)
    q = jnp.dot(q, w_ref[96:160, :], preferred_element_type=jnp.float32) + bo

    # --- bn2 + relu (padded columns: var=0, gamma=beta=0 -> stay zero)
    m = jnp.mean(q, axis=0, keepdims=True)
    msq = jnp.mean(q * q, axis=0, keepdims=True)
    scale = g2 * jax.lax.rsqrt(jnp.maximum(msq - m * m, 0.0) + EPS)
    q = jnp.maximum(q * scale + (be2 - m * scale), 0.0)

    # --- fc_out2 as VPU multiply + lane reduction (skip an N=1 MXU push)
    out_ref[...] = jnp.sum(q * wo2, axis=1, keepdims=True) + bo2


def qnet2_forward(x, a, w_slab, v_slab):
    B = x.shape[0]
    # One fused input: [x | a | zero-pad] -> (B, 32)
    xa = jnp.concatenate([x, a, jnp.zeros((B, 4), x.dtype)], axis=1)
    vmem = pl.BlockSpec(memory_space=pltpu.MemorySpace.VMEM)
    # NOTE: output is (B, 1) -> masked lane store; negligible at small B.  For
    # large-batch use, tile the batch over a grid and emit a lane-dense slab.
    return pl.pallas_call(
        qnet2_kernel,
        out_shape=jax.ShapeDtypeStruct((B, 1), jnp.float32),
        in_specs=[vmem, vmem, vmem],
        out_specs=vmem,
    )(xa, w_slab, v_slab)


qnet2_forward_jit = jax.jit(qnet2_forward)


def pack_params(p):
    """Pack raw QNet2 parameters into the two VMEM slabs (done once, off the
    hot path)."""
    # Weight slab (160, 64)
    w_sa = jnp.zeros((32, 64), jnp.float32)
    w_sa = w_sa.at[0:24, 0:32].set(p["ws"])
    w_sa = w_sa.at[24:28, 32:64].set(p["wa"])
    wo_pad = jnp.zeros((64, 64), jnp.float32).at[:, 0:32].set(p["wo"])
    w_slab = jnp.concatenate([w_sa, p["wq"], wo_pad], axis=0)       # (160, 64)

    def row64(vec):
        return jnp.zeros((64,), jnp.float32).at[: vec.shape[0]].set(vec)

    rows = jnp.stack([
        jnp.concatenate([p["bs"], p["ba"]]),     # b_sa
        p["bq"],
        p["g1"],
        p["be1"],
        row64(p["bo"]),
        row64(p["g2"]),
        row64(p["be2"]),
        row64(p["wo2"][:, 0]),
        jnp.full((64,), p["bo2"][0], jnp.float32),
    ])
    v_slab = jnp.zeros((16, 64), jnp.float32).at[0:9, :].set(rows)  # (16, 64)
    return w_slab, v_slab


def init_params(key):
    ks = jax.random.split(key, 5)

    def lin(k, fan_in, fan_out):
        bound = 1.0 / jnp.sqrt(fan_in)
        kw, kb = jax.random.split(k)
        w = jax.random.uniform(kw, (fan_in, fan_out), jnp.float32, -bound, bound)
        b = jax.random.uniform(kb, (fan_out,), jnp.float32, -bound, bound)
        return w, b

    ws, bs = lin(ks[0], 24, 32)       # fc_s
    wa, ba = lin(ks[1], 4, 32)        # fc_a
    wq, bq = lin(ks[2], 64, 64)       # fc_q
    wo, bo = lin(ks[3], 64, 32)       # fc_out
    wo2, bo2 = lin(ks[4], 32, 1)      # fc_out2

    raw = {
        "ws": ws, "bs": bs,
        "wa": wa, "ba": ba,
        "wq": wq, "bq": bq,
        "g1": jnp.ones((64,), jnp.float32), "be1": jnp.zeros((64,), jnp.float32),
        "wo": wo, "bo": bo,
        "g2": jnp.ones((32,), jnp.float32), "be2": jnp.zeros((32,), jnp.float32),
        "wo2": wo2, "bo2": bo2,
    }
    return raw, pack_params(raw)


def qnet2_ref(x, a, p):
    # Pure-JAX reference (faithful two-pass BN, training-mode batch stats).
    h1 = jnp.maximum(x @ p["ws"] + p["bs"], 0.0)
    h2 = jnp.maximum(a @ p["wa"] + p["ba"], 0.0)
    cat = jnp.concatenate([h1, h2], axis=1)
    q = cat @ p["wq"] + p["bq"]
    m = q.mean(0, keepdims=True); v = ((q - m) ** 2).mean(0, keepdims=True)
    q = jnp.maximum((q - m) / jnp.sqrt(v + EPS) * p["g1"] + p["be1"], 0.0)
    q = q @ p["wo"] + p["bo"]
    m = q.mean(0, keepdims=True); v = ((q - m) ** 2).mean(0, keepdims=True)
    q = jnp.maximum((q - m) / jnp.sqrt(v + EPS) * p["g2"] + p["be2"], 0.0)
    return q @ p["wo2"] + p["bo2"]


if __name__ == "__main__":
    key = jax.random.PRNGKey(0)
    kx, ka, kp = jax.random.split(key, 3)

    B = 8
    x = jax.random.normal(kx, (B, 24), jnp.float32)   # state
    a = jax.random.normal(ka, (B, 4), jnp.float32)    # action
    raw, (w_slab, v_slab) = init_params(kp)

    out = qnet2_forward_jit(x, a, w_slab, v_slab)
    out = jax.block_until_ready(out)

    ref = qnet2_ref(x, a, raw)
    assert out.shape == (B, 1)
    # 1e-4 tolerance: the one-pass (E[q^2]-E[q]^2) BN variance differs from the
    # two-pass reference only by float rounding.
    assert jnp.allclose(out, ref, atol=1e-4, rtol=1e-4), "mismatch vs reference"

    print("KERNEL_OK")
</pallas_src>

<mosaic_0001>
module attributes {stable_mosaic.version = 11 : i64} {
  func.func @qnet2_kernel(%arg0: memref<8x32xf32, #tpu.memory_space<vmem>>, %arg1: memref<160x64xf32, #tpu.memory_space<vmem>>, %arg2: memref<16x64xf32, #tpu.memory_space<vmem>>, %arg3: memref<8x1xf32, #tpu.memory_space<vmem>>) attributes {dimension_semantics = [], scalar_prefetch = 0 : i64, scratch_operands = 0 : i64, tpu.core_type = #tpu.core_type<tc>} {
    %c0 = arith.constant 0 : index
    %c0_0 = arith.constant 0 : index
    %0 = vector.load %arg0[%c0, %c0_0] : memref<8x32xf32, #tpu.memory_space<vmem>>, vector<8x32xf32>
    %c0_1 = arith.constant 0 : index
    %c0_2 = arith.constant 0 : index
    %1 = vector.load %arg2[%c0_1, %c0_2] : memref<16x64xf32, #tpu.memory_space<vmem>>, vector<16x64xf32>
    %2 = vector.extract_strided_slice %1 {offsets = [0, 0], sizes = [1, 64], strides = [1, 1]} : vector<16x64xf32> to vector<1x64xf32>
    %3 = vector.extract_strided_slice %1 {offsets = [1, 0], sizes = [1, 64], strides = [1, 1]} : vector<16x64xf32> to vector<1x64xf32>
    %4 = vector.extract_strided_slice %1 {offsets = [2, 0], sizes = [1, 64], strides = [1, 1]} : vector<16x64xf32> to vector<1x64xf32>
    %5 = vector.extract_strided_slice %1 {offsets = [3, 0], sizes = [1, 64], strides = [1, 1]} : vector<16x64xf32> to vector<1x64xf32>
    %6 = vector.extract_strided_slice %1 {offsets = [4, 0], sizes = [1, 64], strides = [1, 1]} : vector<16x64xf32> to vector<1x64xf32>
    %7 = vector.extract_strided_slice %1 {offsets = [5, 0], sizes = [1, 64], strides = [1, 1]} : vector<16x64xf32> to vector<1x64xf32>
    %8 = vector.extract_strided_slice %1 {offsets = [6, 0], sizes = [1, 64], strides = [1, 1]} : vector<16x64xf32> to vector<1x64xf32>
    %9 = vector.extract_strided_slice %1 {offsets = [7, 0], sizes = [1, 64], strides = [1, 1]} : vector<16x64xf32> to vector<1x64xf32>
    %10 = vector.extract_strided_slice %1 {offsets = [8, 0], sizes = [1, 1], strides = [1, 1]} : vector<16x64xf32> to vector<1x1xf32>
    %c0_3 = arith.constant 0 : index
    %c0_4 = arith.constant 0 : index
    %11 = vector.load %arg1[%c0_3, %c0_4] : memref<160x64xf32, #tpu.memory_space<vmem>>, vector<32x64xf32>
    %cst = arith.constant dense<0.000000e+00> : vector<8x64xf32>
    %12 = tpu.matmul %0, %11, %cst {dimension_numbers = #tpu.dot_dimension_numbers<[1], [0], [0], [1], [0, 0, 1, 1], [], []>} : vector<8x32xf32>, vector<32x64xf32>, vector<8x64xf32> -> vector<8x64xf32>
    %13 = vector.broadcast %2 : vector<1x64xf32> to vector<8x64xf32>
    %14 = arith.addf %12, %13 : vector<8x64xf32>
    %cst_5 = arith.constant 0.000000e+00 : f32
    %15 = vector.broadcast %cst_5 : f32 to vector<8x64xf32>
    %16 = arith.maximumf %14, %15 : vector<8x64xf32>
    %c32 = arith.constant 32 : index
    %c0_6 = arith.constant 0 : index
    %17 = vector.load %arg1[%c32, %c0_6] : memref<160x64xf32, #tpu.memory_space<vmem>>, vector<64x64xf32>
    %cst_7 = arith.constant dense<0.000000e+00> : vector<8x64xf32>
    %18 = tpu.matmul %16, %17, %cst_7 {dimension_numbers = #tpu.dot_dimension_numbers<[1], [0], [0], [1], [0, 0, 1, 1], [], []>} : vector<8x64xf32>, vector<64x64xf32>, vector<8x64xf32> -> vector<8x64xf32>
    %19 = vector.broadcast %3 : vector<1x64xf32> to vector<8x64xf32>
    %20 = arith.addf %18, %19 : vector<8x64xf32>
    %cst_8 = arith.constant dense<0.000000e+00> : vector<64xf32>
    %21 = vector.multi_reduction <add>, %20, %cst_8 [0] : vector<8x64xf32> to vector<64xf32>
    %22 = vector.shape_cast %21 : vector<64xf32> to vector<1x64xf32>
    %cst_9 = arith.constant 8.000000e+00 : f32
    %23 = vector.broadcast %cst_9 : f32 to vector<1x64xf32>
    %24 = arith.divf %22, %23 : vector<1x64xf32>
    %25 = arith.mulf %20, %20 : vector<8x64xf32>
    %cst_10 = arith.constant dense<0.000000e+00> : vector<64xf32>
    %26 = vector.multi_reduction <add>, %25, %cst_10 [0] : vector<8x64xf32> to vector<64xf32>
    %27 = vector.shape_cast %26 : vector<64xf32> to vector<1x64xf32>
    %cst_11 = arith.constant 8.000000e+00 : f32
    %28 = vector.broadcast %cst_11 : f32 to vector<1x64xf32>
    %29 = arith.divf %27, %28 : vector<1x64xf32>
    %30 = arith.mulf %24, %24 : vector<1x64xf32>
    %31 = arith.subf %29, %30 : vector<1x64xf32>
    %cst_12 = arith.constant 0.000000e+00 : f32
    %32 = vector.broadcast %cst_12 : f32 to vector<1x64xf32>
    %33 = arith.maximumf %31, %32 : vector<1x64xf32>
    %cst_13 = arith.constant 9.99999974E-6 : f32
    %34 = vector.broadcast %cst_13 : f32 to vector<1x64xf32>
    %35 = arith.addf %33, %34 : vector<1x64xf32>
    %36 = math.rsqrt %35 : vector<1x64xf32>
    %37 = arith.mulf %4, %36 : vector<1x64xf32>
    %38 = vector.broadcast %37 : vector<1x64xf32> to vector<8x64xf32>
    %39 = arith.mulf %20, %38 : vector<8x64xf32>
    %40 = arith.mulf %24, %37 : vector<1x64xf32>
    %41 = arith.subf %5, %40 : vector<1x64xf32>
    %42 = vector.broadcast %41 : vector<1x64xf32> to vector<8x64xf32>
    %43 = arith.addf %39, %42 : vector<8x64xf32>
    %cst_14 = arith.constant 0.000000e+00 : f32
    %44 = vector.broadcast %cst_14 : f32 to vector<8x64xf32>
    %45 = arith.maximumf %43, %44 : vector<8x64xf32>
    %c96 = arith.constant 96 : index
    %c0_15 = arith.constant 0 : index
    %46 = vector.load %arg1[%c96, %c0_15] : memref<160x64xf32, #tpu.memory_space<vmem>>, vector<64x64xf32>
    %cst_16 = arith.constant dense<0.000000e+00> : vector<8x64xf32>
    %47 = tpu.matmul %45, %46, %cst_16 {dimension_numbers = #tpu.dot_dimension_numbers<[1], [0], [0], [1], [0, 0, 1, 1], [], []>} : vector<8x64xf32>, vector<64x64xf32>, vector<8x64xf32> -> vector<8x64xf32>
    %48 = vector.broadcast %6 : vector<1x64xf32> to vector<8x64xf32>
    %49 = arith.addf %47, %48 : vector<8x64xf32>
    %cst_17 = arith.constant dense<0.000000e+00> : vector<64xf32>
    %50 = vector.multi_reduction <add>, %49, %cst_17 [0] : vector<8x64xf32> to vector<64xf32>
    %51 = vector.shape_cast %50 : vector<64xf32> to vector<1x64xf32>
    %cst_18 = arith.constant 8.000000e+00 : f32
    %52 = vector.broadcast %cst_18 : f32 to vector<1x64xf32>
    %53 = arith.divf %51, %52 : vector<1x64xf32>
    %54 = arith.mulf %49, %49 : vector<8x64xf32>
    %cst_19 = arith.constant dense<0.000000e+00> : vector<64xf32>
    %55 = vector.multi_reduction <add>, %54, %cst_19 [0] : vector<8x64xf32> to vector<64xf32>
    %56 = vector.shape_cast %55 : vector<64xf32> to vector<1x64xf32>
    %cst_20 = arith.constant 8.000000e+00 : f32
    %57 = vector.broadcast %cst_20 : f32 to vector<1x64xf32>
    %58 = arith.divf %56, %57 : vector<1x64xf32>
    %59 = arith.mulf %53, %53 : vector<1x64xf32>
    %60 = arith.subf %58, %59 : vector<1x64xf32>
    %cst_21 = arith.constant 0.000000e+00 : f32
    %61 = vector.broadcast %cst_21 : f32 to vector<1x64xf32>
    %62 = arith.maximumf %60, %61 : vector<1x64xf32>
    %cst_22 = arith.constant 9.99999974E-6 : f32
    %63 = vector.broadcast %cst_22 : f32 to vector<1x64xf32>
    %64 = arith.addf %62, %63 : vector<1x64xf32>
    %65 = math.rsqrt %64 : vector<1x64xf32>
    %66 = arith.mulf %7, %65 : vector<1x64xf32>
    %67 = vector.broadcast %66 : vector<1x64xf32> to vector<8x64xf32>
    %68 = arith.mulf %49, %67 : vector<8x64xf32>
    %69 = arith.mulf %53, %66 : vector<1x64xf32>
    %70 = arith.subf %8, %69 : vector<1x64xf32>
    %71 = vector.broadcast %70 : vector<1x64xf32> to vector<8x64xf32>
    %72 = arith.addf %68, %71 : vector<8x64xf32>
    %cst_23 = arith.constant 0.000000e+00 : f32
    %73 = vector.broadcast %cst_23 : f32 to vector<8x64xf32>
    %74 = arith.maximumf %72, %73 : vector<8x64xf32>
    %75 = vector.broadcast %9 : vector<1x64xf32> to vector<8x64xf32>
    %76 = arith.mulf %74, %75 : vector<8x64xf32>
    %cst_24 = arith.constant dense<0.000000e+00> : vector<8xf32>
    %77 = vector.multi_reduction <add>, %76, %cst_24 [1] : vector<8x64xf32> to vector<8xf32>
    %78 = vector.shape_cast %77 : vector<8xf32> to vector<8x1xf32>
    %79 = vector.broadcast %10 : vector<1x1xf32> to vector<8x1xf32>
    %80 = arith.addf %78, %79 : vector<8x1xf32>
    %c0_25 = arith.constant 0 : index
    %c0_26 = arith.constant 0 : index
    %81 = vector.load %arg3[%c0_25, %c0_26] : memref<8x1xf32, #tpu.memory_space<vmem>>, vector<8x1xf32>
    tpu.vector_store %arg3[%c0_25, %c0_26], %80 {strides = array<i32>} : memref<8x1xf32, #tpu.memory_space<vmem>>, vector<8x1xf32>,
    return
  }
}

</mosaic_0001>

<bundles_post_ra>
// kernel: qnet2_forward.1
= control target key start
LH: loop header
LB: loop body
LE: loop exit
PB: predicated region body
PF: predicated region fallthrough
CT: control target
= control target key end

     0   :  { %v481_v0 = vmov 0.0|0.0   ;;  %vm482_vm0 = vmmov 0   ;;  %v483_v4 = vmov 0.0   ;;  %vm25_vm1 = vcmask 261120   ;;  %s620_s1 = inlined_call_operand.vmem [shape: f32[160,64], index: 1, kind: input, shape index: {}]   ;;  %s621_s0 = inlined_call_operand.vmem [shape: f32[8,32], index: 0, kind: input, shape index: {}]   ;;  %s622_s2 = inlined_call_operand.vmem [shape: f32[16,64], index: 2, kind: input, shape index: {}]   ;;  %s623_s3 = inlined_call_operand.vmem [shape: f32[8,1], index: 3, kind: output, shape index: {}]  }
   0x1   :  { %444 = vmatprep.subr.bf16.mxu0 %v481_v0  ;;  %v17_v1 = vld [vmem:[%s620_s1] sm:$0xff]  ;;  %v18_v2 = vld [vmem:[%s620_s1 + $0x8] sm:$0xff]  ;;  %v19_v3 = vld [vmem:[%s620_s1 + $0x10] sm:$0xff]  ;;  %403 = vmatprep.mubr.msk.f32.mxu0 %vm482_vm0, %v483_v4  ;;  %v21_v21 = vlaneseq  ;;  %vm112_vm2 = vcmask 523264   ;;  %vm363_vm3 = vcmask 7168  }
   0x2   :  { %v445_v5 = vpack.c.bf16 %v18_v2, %v17_v1  ;;  %v20_v6 = vld [vmem:[%s620_s1 + $0x18] sm:$0xff]  ;;  %450 = vmatprep.subr.bf16.mxu1 %v481_v0  ;;  %v100_v7 = vld [vmem:[%s620_s1 + $0x20] sm:$0xff]  ;;  %422 = vmatprep.mubr.msk.f32.mxu1 %vm482_vm0, %v483_v4  ;;  %v101_v8 = vld [vmem:[%s620_s1 + $0x28] sm:$0xff] }
   0x3   :  { %v102_v9 = vld [vmem:[%s620_s1 + $0x30] sm:$0xff]  ;;  %v103_v10 = vld [vmem:[%s620_s1 + $0x38] sm:$0xff]  ;;  %v448_v11 = vpack.c.bf16 %v20_v6, %v19_v3  ;;  %v451_v12 = vpack.c.bf16 %v101_v8, %v100_v7  ;;  %v104_v14 = vld [vmem:[%s620_s1 + $0x40] sm:$0xff]  ;;  %v553_v22 = vshrl.u32 %v21_v21, 7 }
   0x4   :  { %446 = vmatpush3.bf16.msra.mxu0 %v445_v5  ;;  %v454_v13 = vpack.c.bf16 %v103_v10, %v102_v9  ;;  %v105_v15 = vld [vmem:[%s620_s1 + $0x48] sm:$0xff]  ;;  %v14_v16 = vld [vmem:[%s621_s0] sm:$0xff]  ;;  %v106_v18 = vld [vmem:[%s620_s1 + $0x50] sm:$0xff] }
   0x5   :  { %447 = vmatprep.subr.bf16.mxu0 %v481_v0  ;;  %452 = vmatpush3.bf16.msra.mxu1 %v451_v12  ;;  %v457_v17 = vpack.c.bf16 %v105_v15, %v104_v14  ;;  %v107_v19 = vld [vmem:[%s620_s1 + $0x58] sm:$0xff]  ;;  %v23_v23 = vsub.s32 0, %v553_v22  ;;  %v559_v24 = vld [vmem:[%s622_s2] sm:$0xff]  ;;  %v227_v31 = vld [vmem:[%s620_s1 + $0x68] sm:$0xff]  ;;  %v110_v42 = vsub.s32 1, %v553_v22  ;;  %v212_v6 = vsub.s32 2, %v553_v22 }
   0x6   :  { %453 = vmatprep.subr.bf16.mxu1 %v481_v0  ;;  %v460_v20 = vpack.c.bf16 %v107_v19, %v106_v18  ;;  %v226_v30 = vld [vmem:[%s620_s1 + $0x60] sm:$0xff]  ;;  %v228_v33 = vld [vmem:[%s620_s1 + $0x70] sm:$0xff]  ;;  %v229_v34 = vld [vmem:[%s620_s1 + $0x78] sm:$0xff]  ;;  %v222_v10 = vsub.s32 3, %v553_v22 }
   0x7   :  { %v24_v25 = vrot.slane %v559_v24, %v23_v23  ;;  %v463_v32 = vpack.c.bf16 %v227_v31, %v226_v30  ;;  %v466_v35 = vpack.c.bf16 %v229_v34, %v228_v33  ;;  %v230_v36 = vld [vmem:[%s620_s1 + $0x80] sm:$0xff]  ;;  %v231_v37 = vld [vmem:[%s620_s1 + $0x88] sm:$0xff]  ;;  %v232_v39 = vld [vmem:[%s620_s1 + $0x90] sm:$0xff]  ;;  %v111_v43 = vrot.slane %v559_v24, %v110_v42 }
   0x8   :  { %449 = vmatpush3.bf16.msra.mxu0 %v448_v11  ;;  %v469_v38 = vpack.c.bf16 %v231_v37, %v230_v36  ;;  %v233_v40 = vld [vmem:[%s620_s1 + $0x98] sm:$0xff] }
   0x9   :  { %462 = vmatprep.subr.bf16.mxu0 %v481_v0  ;;  %455 = vmatpush3.bf16.msra.mxu1 %v454_v13  ;;  %v472_v41 = vpack.c.bf16 %v233_v40, %v232_v39 }
   0xa   :  { %456 = vmatprep.subr.bf16.mxu1 %v481_v0 }
   0xb   :  { %404 = vmatmul.mubr.msk.f32.vlgmr.msra.gmra.mrb[0].mxu0 %vm25_vm1, %v14_v16  ;;  %v236_v16 = vsub.s32 4, %v553_v22 }
   0xc   :  { %441 = vmatprep.mubr.msk.f32.mxu0 %vm482_vm0, %v483_v4  ;;  %464 = vmatpush3.bf16.msra.mxu0 %v463_v32 }
   0xd   :  { %458 = vmatpush3.bf16.msra.mxu1 %v457_v17  ;;  %465 = vmatprep.subr.bf16.mxu0 %v481_v0  ;;  %v237_v17 = vrot.slane %v559_v24, %v236_v16 }
   0xe   :  { %459 = vmatprep.subr.bf16.mxu1 %v481_v0 }
  0x10   :  { %467 = vmatpush3.bf16.msra.mxu0 %v466_v35 }
  0x11   :  { %461 = vmatpush3.bf16.msra.mxu1 %v460_v20  ;;  %468 = vmatprep.subr.bf16.mxu0 %v481_v0 }
  0x14   :  { %470 = vmatpush3.bf16.msra.mxu0 %v469_v38 }
  0x15   :  { %471 = vmatprep.subr.bf16.mxu0 %v481_v0 }
  0x18   :  { %473 = vmatpush3.bf16.msra.mxu0 %v472_v41 }
  0xde   :  { %v95_v26 = vpop.f32.mrb[0].mxu0 }
  0xdf   :  { %v96_v27 = vadd.f32 %v95_v26, %v24_v25  ;;  %v405_v28 = vpop.f32.mrb[1].mxu0 }
  0xe1   :  { %v99_v29 = vmax.f32 %v96_v27, 0.0 }
  0xe3   :  { %423 = vmatmul.mubr.msk.f32.vlgmr.msra.gmra.mrb[0].mxu1 %vm112_vm2, %v99_v29 }
 0x1b6   :  { %v182_v44 = vpop.f32.mrb[0].mxu1 }
 0x1b7   :  { %v183_v45 = vadd.f32 %v182_v44, %v111_v43  ;;  %v424_v46 = vpop.f32.mrb[1].mxu1 }
 0x1b9   :  { %v186_v47 = vsel %vm112_vm2, %v183_v45, 0.0  ;;  %v195_v48 = vmul.f32 %v183_v45, %v183_v45 }
 0x1ba   :  { %v187_v49 = vrot.slane %v186_v47, 4 }
 0x1bb   :  { %v196_v50 = vsel %vm112_vm2, %v195_v48, 0.0 }
 0x1bc   :  { %v188_v51 = vadd.f32 %v187_v49, %v186_v47  ;;  %v197_v52 = vrot.slane %v196_v50, 4  ;;  %v336_v47 = vsub.s32 5, %v553_v22 }
 0x1be   :  { %v189_v53 = vrot.slane %v188_v51, 2  ;;  %v198_v54 = vadd.f32 %v197_v52, %v196_v50 }
 0x1c0   :  { %v190_v55 = vadd.f32 %v189_v53, %v188_v51  ;;  %v199_v56 = vrot.slane %v198_v54, 2  ;;  %v346_v51 = vsub.s32 6, %v553_v22  ;;  %v352_v53 = vsub.s32 7, %v553_v22 }
 0x1c2   :  { %v191_v57 = vrot.slane %v190_v55, 1  ;;  %v200_v58 = vadd.f32 %v199_v56, %v198_v54 }
 0x1c4   :  { %v192_v59 = vadd.f32 %v191_v57, %v190_v55  ;;  %v201_v60 = vrot.slane %v200_v58, 1  ;;  %v353_v57 = vrot.slane %v559_v24, %v352_v53 }
 0x1c6   :  { %v194_v61 = vmul.f32 0.125, %v192_v59  ;;  %v202_v62 = vadd.f32 %v201_v60, %v200_v58 }
 0x1c8   :  { %v203_v63 = vmul.f32 0.125, %v202_v62  ;;  %v204_v0 = vmul.f32 %v194_v61, %v194_v61 }
 0x1ca   :  { %v205_v1 = vsub.f32 %v203_v63, %v204_v0 }
 0x1cc   :  { %v206_v2 = vmax.f32 %v205_v1, 0.0 }
 0x1ce   :  { %v207_v3 = vadd.f32 1e-05, %v206_v2 }
 0x1d0   :  { %477 = vrsqrt.f32 %v207_v3 }
 0x1da   :  { %v478_v4 = vpop.eup %477 }
 0x1db   :  { %v209_v5 = vmul.f32 %v478_v4, %v559_v24 }
 0x1dd   :  { %v215_v7 = vmul.f32 %v209_v5, %v194_v61  ;;  %v213_v8 = vrot.slane %v209_v5, %v212_v6  ;;  %v16_v61 = vld [vmem:[%s622_s2 + $0x8] sm:$0xff] }
 0x1de   :  { %v361_v62 = vrot.slane %v16_v61, %v23_v23 }
 0x1df   :  { %v217_v9 = vrot.slane %v215_v7, 7  ;;  %v214_v12 = vmul.f32 %v213_v8, %v183_v45 }
 0x1e1   :  { %v219_v11 = vsub.f32 %v559_v24, %v217_v9 }
 0x1e3   :  { %v223_v13 = vrot.slane %v219_v11, %v222_v10 }
 0x1e5   :  { %v224_v14 = vadd.f32 %v223_v13, %v214_v12 }
 0x1e7   :  { %v225_v15 = vmax.f32 %v224_v14, 0.0 }
 0x1e9   :  { %442 = vmatmul.mubr.msk.f32.vlgmr.msra.gmra.mrb[2].mxu0 %vm112_vm2, %v225_v15 }
 0x2bc   :  { %v307_v18 = vpop.f32.mrb[2].mxu0 }
 0x2bd   :  { %v308_v19 = vadd.f32 %v307_v18, %v237_v17  ;;  %v443_v20 = vpop.f32.mrb[3].mxu0 }
 0x2bf   :  { %v311_v21 = vsel %vm112_vm2, %v308_v19, 0.0  ;;  %v319_v25 = vmul.f32 %v308_v19, %v308_v19 }
 0x2c0   :  { %v312_v26 = vrot.slane %v311_v21, 4 }
 0x2c1   :  { %v320_v27 = vsel %vm112_vm2, %v319_v25, 0.0 }
 0x2c2   :  { %v313_v28 = vadd.f32 %v312_v26, %v311_v21  ;;  %v321_v29 = vrot.slane %v320_v27, 4 }
 0x2c4   :  { %v314_v30 = vrot.slane %v313_v28, 2  ;;  %v322_v31 = vadd.f32 %v321_v29, %v320_v27 }
 0x2c6   :  { %v315_v32 = vadd.f32 %v314_v30, %v313_v28  ;;  %v323_v33 = vrot.slane %v322_v31, 2 }
 0x2c8   :  { %v316_v34 = vrot.slane %v315_v32, 1  ;;  %v324_v35 = vadd.f32 %v323_v33, %v322_v31 }
 0x2ca   :  { %v317_v36 = vadd.f32 %v316_v34, %v315_v32  ;;  %v325_v37 = vrot.slane %v324_v35, 1 }
 0x2cc   :  { %v318_v38 = vmul.f32 0.125, %v317_v36  ;;  %v326_v39 = vadd.f32 %v325_v37, %v324_v35 }
 0x2ce   :  { %v327_v40 = vmul.f32 0.125, %v326_v39  ;;  %v328_v41 = vmul.f32 %v318_v38, %v318_v38 }
 0x2d0   :  { %v329_v42 = vsub.f32 %v327_v40, %v328_v41 }
 0x2d2   :  { %v330_v43 = vmax.f32 %v329_v42, 0.0 }
 0x2d4   :  { %v331_v44 = vadd.f32 1e-05, %v330_v43 }
 0x2d6   :  { %479 = vrsqrt.f32 %v331_v44 }
 0x2e0   :  { %v480_v45 = vpop.eup %479 }
 0x2e1   :  { %v333_v46 = vmul.f32 %v480_v45, %v559_v24 }
 0x2e3   :  { %v339_v48 = vmul.f32 %v333_v46, %v318_v38  ;;  %v337_v49 = vrot.slane %v333_v46, %v336_v47 }
 0x2e5   :  { %v341_v50 = vrot.slane %v339_v48, 7  ;;  %v338_v54 = vmul.f32 %v337_v49, %v308_v19 }
 0x2e7   :  { %v343_v52 = vsub.f32 %v559_v24, %v341_v50 }
 0x2e9   :  { %v347_v55 = vrot.slane %v343_v52, %v346_v51 }
 0x2eb   :  { %v348_v56 = vadd.f32 %v347_v55, %v338_v54 }
 0x2ed   :  { %v349_v58 = vmax.f32 %v348_v56, 0.0 }
 0x2ef   :  { %v354_v59 = vmul.f32 %v353_v57, %v349_v58 }
 0x2f1   :  { %v355_v60 = vsel %vm112_vm2, %v354_v59, 0.0 }
 0x2f2   :  { %356 = vadd.xlane.f32.xlu0 %v355_v60 }
 0x37f   :  { %v357_v63 = vpop.xlane.xlu0 %356 }
 0x380   :  { %v362_v0 = vadd.f32 %v361_v62, %v357_v63 }
 0x382   :  { %364 = vst.msk [vmem:[%s623_s3] sm:$0xff] %vm363_vm3, %v362_v0 }

</bundles_post_ra>
